<compile_context>
chip_gen: v7x
topology: tpu7x:2x2x1
jax: 0.10.0
libtpu: 0.0.40
codegen_flags: <defaults>
</compile_context>

<pallas_src>
import functools

import jax
import jax.numpy as jnp
from jax import lax
from jax.experimental import pallas as pl
from jax.experimental.pallas import tpu as pltpu


def _dice_kernel(*refs, hw, tile_hw, has_mask, do_softmax, need_valid):
    if has_mask:
        score_ref, tgt_ref, mask_ref, out_ref = refs
    else:
        score_ref, tgt_ref, out_ref = refs
        mask_ref = None

    t = pl.program_id(1)

    @pl.when(t == 0)
    def _init():
        out_ref[...] = jnp.zeros_like(out_ref)

    score = score_ref[...].astype(jnp.float32)           # (Bb, C, T)
    Bb, C, T = score.shape

    valid = None
    if need_valid:
        col = lax.broadcasted_iota(jnp.int32, (1, 1, T), 2) + t * tile_hw
        valid = col < hw                                  # (1, 1, T) bool
        # Sanitize the undefined tail of the boundary block BEFORE max/exp so
        # NaN/garbage cannot poison the softmax or the masked sums.
        neutral = -1e30 if do_softmax else 0.0
        score = jnp.where(valid, score, neutral)

    if do_softmax:
        # class axis on sublanes -> axis-1 reduce (XLU) + exp (EUP)
        score = score - jnp.max(score, axis=1, keepdims=True)
        e = jnp.exp(score)
        denom = jnp.sum(e, axis=1, keepdims=True)
        # One reciprocal per column + C multiplies instead of C divides.
        score = e * pl.reciprocal(denom, approx=False)
        # TODO(synk): on the 2-XLU chips (v6e/v7x) the class-sum could be
        # offloaded to the MXU (ones(1,C) @ e) if profiling shows the XLU as
        # the binding slot; measure before committing.

    labels = tgt_ref[...].astype(jnp.int32)               # (Bb, 1, T)
    class_ids = lax.broadcasted_iota(jnp.int32, (Bb, C, T), 1)
    onehot_b = jnp.broadcast_to(labels, (Bb, C, T)) == class_ids   # exact

    # Effective mask = (optional user mask) combined with the valid-lane mask.
    if has_mask:
        um = mask_ref[...].astype(jnp.float32)            # (Bb, 1, T)
        m = jnp.where(valid, um, 0.0) if need_valid else um
    elif need_valid:
        m = valid.astype(jnp.float32)
    else:
        m = None

    def rsum(x):                                          # (Bb, C, T) -> (1, C, 1)
        return jnp.sum(jnp.sum(x, axis=2, keepdims=True), axis=0, keepdims=True)

    if m is None:
        i_part = rsum(jnp.where(onehot_b, score, 0.0))
        y_part = rsum(onehot_b.astype(jnp.float32))
        z_part = rsum(score * score)
    else:
        mb = jnp.broadcast_to(m, (Bb, C, T))
        sm = score * mb                                   # s*m, reused
        i_part = rsum(jnp.where(onehot_b, sm, 0.0))
        y_part = rsum(jnp.where(onehot_b, mb, 0.0))
        z_part = rsum(sm * score)                         # s*s*m

    # Output block is VMEM-resident across the t axis (index map ignores t).
    out_ref[:, :, 0:1] += i_part
    out_ref[:, :, 1:2] += y_part
    out_ref[:, :, 2:3] += z_part


def _largest_divisor_at_most(n, cap):
    cap = max(1, min(n, cap))
    for d in range(cap, 0, -1):
        if n % d == 0:
            return d
    return 1


def _vmem_limit_bytes():
    try:
        phys = int(pltpu.get_tpu_info().vmem_capacity_bytes)
    except Exception:
        phys = 64 * 1024 * 1024
    return min(phys // 2, 48 * 1024 * 1024)


def dice_loss(inputs, target, mask=None, weight=None, softmax=False,
              tile_hw=None):
    """Pallas equivalent of DiceLoss.forward.

    inputs: [B, C, H, W] logits/probabilities (NCHW, like PyTorch), f32 or bf16
    target: [B, 1, H, W] integer class labels (any integer dtype)
    mask:   optional [B, 1, H, W] (any numeric/bool dtype)
    weight: optional length-C per-class weights
    """
    B, C, H, W = inputs.shape
    HW = H * W

    # Free reshapes only: no padding pass, no dtype-widening passes in HBM.
    score = inputs.reshape(B, C, HW)
    tgt = target.reshape(B, 1, HW)                    # native dtype; widened in-kernel
    mask_a = None if mask is None else mask.reshape(B, 1, HW)
    has_mask = mask_a is not None

    itemsize = jnp.dtype(score.dtype).itemsize
    tgt_isz = jnp.dtype(tgt.dtype).itemsize
    msk_isz = jnp.dtype(mask_a.dtype).itemsize if has_mask else 0

    # Tile sizing: account for the ~8 live f32 (C, T) temporaries in the body
    # plus double-buffered input DMA; cap at 4096 columns (large tiles buy
    # nothing once past ~512 columns and risk VMEM pressure on v7x).
    if tile_hw is None:
        temp_bytes_per_col = 8 * C * 4
        in_bytes_per_col = 2 * (C * itemsize + tgt_isz + msk_isz)
        budget = 12 * 1024 * 1024
        tile_hw = budget // max(1, temp_bytes_per_col + in_bytes_per_col)
        tile_hw = min(tile_hw, 4096)
    hw_128 = pl.cdiv(HW, 128) * 128
    tile_hw = max(128, (min(int(tile_hw), hw_128) // 128) * 128)

    n_tiles = pl.cdiv(HW, tile_hw)
    need_valid = (n_tiles * tile_hw) != HW

    # Amortize per-grid-step overhead for small spatial inputs by blocking
    # several batch elements per step (divisors of B only: no batch tail).
    if n_tiles == 1 and tile_hw < 2048:
        b_blk = _largest_divisor_at_most(B, max(1, 2048 // tile_hw))
    else:
        b_blk = 1
    n_bblk = B // b_blk

    in_specs = [
        pl.BlockSpec((b_blk, C, tile_hw), lambda b, t: (b, 0, t)),   # score
        pl.BlockSpec((b_blk, 1, tile_hw), lambda b, t: (b, 0, t)),   # labels
    ]
    operands = [score, tgt]
    if has_mask:
        in_specs.append(
            pl.BlockSpec((b_blk, 1, tile_hw), lambda b, t: (b, 0, t)))
        operands.append(mask_a)

    kernel = functools.partial(
        _dice_kernel, hw=HW, tile_hw=tile_hw, has_mask=has_mask,
        do_softmax=softmax, need_valid=need_valid)

    partials = pl.pallas_call(
        kernel,
        out_shape=jax.ShapeDtypeStruct((n_bblk, C, 3), jnp.float32),
        grid_spec=pltpu.PrefetchScalarGridSpec(
            num_scalar_prefetch=0,
            grid=(n_bblk, n_tiles),
            in_specs=in_specs,
            out_specs=pl.BlockSpec((1, C, 3), lambda b, t: (b, 0, 0)),
        ),
        compiler_params=pltpu.CompilerParams(
            dimension_semantics=("parallel", "arbitrary"),
            vmem_limit_bytes=_vmem_limit_bytes()),
    )(*operands)

    # Tiny epilogue in plain JAX: reduce per-batch-block partials, weighted dice.
    sums = jnp.sum(partials, axis=0)                  # (C, 3)
    i_sum, y_sum, z_sum = sums[:, 0], sums[:, 1], sums[:, 2]
    smooth = 1e-10
    dice = 1.0 - (2.0 * i_sum + smooth) / (z_sum + y_sum + smooth)
    if weight is None:
        w = jnp.ones((C,), jnp.float32)
    else:
        w = jnp.asarray(weight, jnp.float32).reshape(C)
    return jnp.sum(w * dice) / jnp.float32(C)


def _dice_loss_ref(inputs, target, mask=None, weight=None, softmax=False):
    """Pure-JAX reference mirroring the PyTorch module."""
    B, C, H, W = inputs.shape
    inputs = inputs.astype(jnp.float32)
    if softmax:
        inputs = jax.nn.softmax(inputs, axis=1)
    if weight is None:
        weight = [1.0] * C
    onehot = jnp.concatenate(
        [(target == i).astype(jnp.float32) for i in range(C)], axis=1)
    smooth = 1e-10
    loss = 0.0
    for i in range(C):
        s = inputs[:, i]
        t = onehot[:, i]
        if mask is not None:
            m = mask[:, 0].astype(jnp.float32)
            inter = jnp.sum(s * t * m)
            y = jnp.sum(t * t * m)
            z = jnp.sum(s * s * m)
        else:
            inter = jnp.sum(s * t)
            y = jnp.sum(t * t)
            z = jnp.sum(s * s)
        dice = 1.0 - (2.0 * inter + smooth) / (z + y + smooth)
        loss = loss + dice * weight[i]
    return loss / C


if __name__ == "__main__":
    key = jax.random.PRNGKey(0)
    k1, k2, k3, k4, k5, k6 = jax.random.split(key, 6)

    B, C, H, W = 2, 4, 16, 16
    logits = jax.random.normal(k1, (B, C, H, W), jnp.float32)
    labels = jax.random.randint(k2, (B, 1, H, W), 0, C, jnp.int32)
    msk = (jax.random.uniform(k3, (B, 1, H, W)) > 0.3).astype(jnp.float32)

    # case 1: fused softmax, no mask (specialized path, no ones-mask DMA)
    out1 = jax.block_until_ready(dice_loss(logits, labels, softmax=True))
    ref1 = jax.block_until_ready(_dice_loss_ref(logits, labels, softmax=True))

    # case 2: mask + per-class weights
    wts = [1.0, 2.0, 0.5, 1.5]
    out2 = jax.block_until_ready(
        dice_loss(logits, labels, mask=msk, weight=wts, softmax=True))
    ref2 = jax.block_until_ready(
        _dice_loss_ref(logits, labels, mask=msk, weight=wts, softmax=True))

    # case 3: bf16 inputs + non-multiple-of-128 spatial (un-padded partial tile
    # handled by the in-kernel valid-lane mask; boundary-block tail sanitized)
    H2, W2 = 10, 10
    logits3 = jax.random.normal(k4, (B, C, H2, W2), jnp.float32).astype(jnp.bfloat16)
    labels3 = jax.random.randint(k5, (B, 1, H2, W2), 0, C, jnp.int32)
    msk3 = (jax.random.uniform(k6, (B, 1, H2, W2)) > 0.4).astype(jnp.float32)
    out3 = jax.block_until_ready(
        dice_loss(logits3, labels3, mask=msk3, weight=wts, softmax=True))
    ref3 = jax.block_until_ready(
        _dice_loss_ref(logits3, labels3, mask=msk3, weight=wts, softmax=True))

    assert jnp.allclose(out1, ref1, rtol=5e-5, atol=1e-6), (out1, ref1)
    assert jnp.allclose(out2, ref2, rtol=5e-5, atol=1e-6), (out2, ref2)
    assert jnp.allclose(out3, ref3, rtol=5e-5, atol=1e-6), (out3, ref3)

    # TODO(synk): class_wise_dice (per-class .item() list) is not returned by
    # forward(), so it is not materialized here.
    print("KERNEL_OK")
</pallas_src>

<mosaic_0001>
module attributes {stable_mosaic.version = 11 : i64} {
  func.func @_dice_kernel(%arg0: i32, %arg1: i32, %arg2: memref<2x4x256xf32, #tpu.memory_space<vmem>>, %arg3: memref<2x1x256xi32, #tpu.memory_space<vmem>>, %arg4: memref<1x4x3xf32, #tpu.memory_space<vmem>>) attributes {dimension_semantics = [#tpu.dimension_semantics<parallel>, #tpu.dimension_semantics<arbitrary>], iteration_bounds = array<i64: 1, 1>, scalar_prefetch = 0 : i64, scratch_operands = 0 : i64, tpu.core_type = #tpu.core_type<tc>, window_params = [{transform_indices = @transform_0, window_bounds = array<i64: 2, 4, 256>}, {transform_indices = @transform_1, window_bounds = array<i64: 2, 1, 256>}, {transform_indices = @transform_2, window_bounds = array<i64: 1, 4, 3>}]} {
    %c0_i32 = arith.constant 0 : i32
    %0 = arith.cmpi eq, %arg1, %c0_i32 : i32
    %1 = arith.extui %0 : i1 to i32
    %c0_i32_0 = arith.constant 0 : i32
    %2 = arith.cmpi ne, %1, %c0_i32_0 : i32
    scf.if %2 {
      %cst_30 = arith.constant 0.000000e+00 : f32
      %45 = vector.broadcast %cst_30 : f32 to vector<1x4x3xf32>
      %c0_31 = arith.constant 0 : index
      %c0_32 = arith.constant 0 : index
      %c0_33 = arith.constant 0 : index
      %46 = vector.load %arg4[%c0_31, %c0_32, %c0_33] : memref<1x4x3xf32, #tpu.memory_space<vmem>>, vector<1x4x3xf32>
      tpu.vector_store %arg4[%c0_31, %c0_32, %c0_33], %45 {strides = array<i32>} : memref<1x4x3xf32, #tpu.memory_space<vmem>>, vector<1x4x3xf32>,
    } else {
    }
    %c0 = arith.constant 0 : index
    %c0_1 = arith.constant 0 : index
    %c0_2 = arith.constant 0 : index
    %3 = vector.load %arg2[%c0, %c0_1, %c0_2] : memref<2x4x256xf32, #tpu.memory_space<vmem>>, vector<2x4x256xf32>
    %cst = arith.constant dense<0xFF800000> : vector<2x256xf32>
    %4 = vector.multi_reduction <maximumf>, %3, %cst [1] : vector<2x4x256xf32> to vector<2x256xf32>
    %5 = vector.shape_cast %4 : vector<2x256xf32> to vector<2x1x256xf32>
    %6 = vector.broadcast %5 : vector<2x1x256xf32> to vector<2x4x256xf32>
    %7 = arith.subf %3, %6 : vector<2x4x256xf32>
    %8 = math.exp %7 : vector<2x4x256xf32>
    %cst_3 = arith.constant dense<0.000000e+00> : vector<2x256xf32>
    %9 = vector.multi_reduction <add>, %8, %cst_3 [1] : vector<2x4x256xf32> to vector<2x256xf32>
    %10 = vector.shape_cast %9 : vector<2x256xf32> to vector<2x1x256xf32>
    %11 = tpu.reciprocal %10 : vector<2x1x256xf32> -> vector<2x1x256xf32>
    %12 = vector.broadcast %11 : vector<2x1x256xf32> to vector<2x4x256xf32>
    %13 = arith.mulf %8, %12 : vector<2x4x256xf32>
    %c0_4 = arith.constant 0 : index
    %c0_5 = arith.constant 0 : index
    %c0_6 = arith.constant 0 : index
    %14 = vector.load %arg3[%c0_4, %c0_5, %c0_6] : memref<2x1x256xi32, #tpu.memory_space<vmem>>, vector<2x1x256xi32>
    %15 = tpu.iota {dimensions = array<i32: 1>} : vector<2x4x256xi32>
    %16 = vector.shape_cast %14 : vector<2x1x256xi32> to vector<2x1x256xi32>
    %17 = vector.broadcast %16 : vector<2x1x256xi32> to vector<2x4x256xi32>
    %18 = arith.cmpi eq, %17, %15 : vector<2x4x256xi32>
    %cst_7 = arith.constant 0.000000e+00 : f32
    %19 = vector.broadcast %cst_7 : f32 to vector<2x4x256xf32>
    %20 = arith.select %18, %13, %19 : vector<2x4x256xi1>, vector<2x4x256xf32>
    %cst_8 = arith.constant dense<0.000000e+00> : vector<2x4xf32>
    %21 = vector.multi_reduction <add>, %20, %cst_8 [2] : vector<2x4x256xf32> to vector<2x4xf32>
    %22 = vector.shape_cast %21 : vector<2x4xf32> to vector<2x4x1xf32>
    %cst_9 = arith.constant dense<0.000000e+00> : vector<4x1xf32>
    %23 = vector.multi_reduction <add>, %22, %cst_9 [0] : vector<2x4x1xf32> to vector<4x1xf32>
    %24 = vector.shape_cast %23 : vector<4x1xf32> to vector<1x4x1xf32>
    %25 = arith.extui %18 : vector<2x4x256xi1> to vector<2x4x256xi32>
    %26 = arith.sitofp %25 : vector<2x4x256xi32> to vector<2x4x256xf32>
    %cst_10 = arith.constant dense<0.000000e+00> : vector<2x4xf32>
    %27 = vector.multi_reduction <add>, %26, %cst_10 [2] : vector<2x4x256xf32> to vector<2x4xf32>
    %28 = vector.shape_cast %27 : vector<2x4xf32> to vector<2x4x1xf32>
    %cst_11 = arith.constant dense<0.000000e+00> : vector<4x1xf32>
    %29 = vector.multi_reduction <add>, %28, %cst_11 [0] : vector<2x4x1xf32> to vector<4x1xf32>
    %30 = vector.shape_cast %29 : vector<4x1xf32> to vector<1x4x1xf32>
    %31 = arith.mulf %13, %13 : vector<2x4x256xf32>
    %cst_12 = arith.constant dense<0.000000e+00> : vector<2x4xf32>
    %32 = vector.multi_reduction <add>, %31, %cst_12 [2] : vector<2x4x256xf32> to vector<2x4xf32>
    %33 = vector.shape_cast %32 : vector<2x4xf32> to vector<2x4x1xf32>
    %cst_13 = arith.constant dense<0.000000e+00> : vector<4x1xf32>
    %34 = vector.multi_reduction <add>, %33, %cst_13 [0] : vector<2x4x1xf32> to vector<4x1xf32>
    %35 = vector.shape_cast %34 : vector<4x1xf32> to vector<1x4x1xf32>
    %c0_14 = arith.constant 0 : index
    %c0_15 = arith.constant 0 : index
    %c0_16 = arith.constant 0 : index
    %36 = vector.load %arg4[%c0_14, %c0_15, %c0_16] : memref<1x4x3xf32, #tpu.memory_space<vmem>>, vector<1x4x1xf32>
    %37 = arith.addf %36, %24 : vector<1x4x1xf32>
    %c0_17 = arith.constant 0 : index
    %c0_18 = arith.constant 0 : index
    %c0_19 = arith.constant 0 : index
    %38 = vector.load %arg4[%c0_17, %c0_18, %c0_19] : memref<1x4x3xf32, #tpu.memory_space<vmem>>, vector<1x4x1xf32>
    tpu.vector_store %arg4[%c0_17, %c0_18, %c0_19], %37 {strides = array<i32>} : memref<1x4x3xf32, #tpu.memory_space<vmem>>, vector<1x4x1xf32>,
    %c0_20 = arith.constant 0 : index
    %c0_21 = arith.constant 0 : index
    %c1 = arith.constant 1 : index
    %39 = vector.load %arg4[%c0_20, %c0_21, %c1] : memref<1x4x3xf32, #tpu.memory_space<vmem>>, vector<1x4x1xf32>
    %40 = arith.addf %39, %30 : vector<1x4x1xf32>
    %c0_22 = arith.constant 0 : index
    %c0_23 = arith.constant 0 : index
    %c1_24 = arith.constant 1 : index
    %41 = vector.load %arg4[%c0_22, %c0_23, %c1_24] : memref<1x4x3xf32, #tpu.memory_space<vmem>>, vector<1x4x1xf32>
    tpu.vector_store %arg4[%c0_22, %c0_23, %c1_24], %40 {strides = array<i32>} : memref<1x4x3xf32, #tpu.memory_space<vmem>>, vector<1x4x1xf32>,
    %c0_25 = arith.constant 0 : index
    %c0_26 = arith.constant 0 : index
    %c2 = arith.constant 2 : index
    %42 = vector.load %arg4[%c0_25, %c0_26, %c2] : memref<1x4x3xf32, #tpu.memory_space<vmem>>, vector<1x4x1xf32>
    %43 = arith.addf %42, %35 : vector<1x4x1xf32>
    %c0_27 = arith.constant 0 : index
    %c0_28 = arith.constant 0 : index
    %c2_29 = arith.constant 2 : index
    %44 = vector.load %arg4[%c0_27, %c0_28, %c2_29] : memref<1x4x3xf32, #tpu.memory_space<vmem>>, vector<1x4x1xf32>
    tpu.vector_store %arg4[%c0_27, %c0_28, %c2_29], %43 {strides = array<i32>} : memref<1x4x3xf32, #tpu.memory_space<vmem>>, vector<1x4x1xf32>,
    return
  }
  func.func @transform_0(%arg0: i32, %arg1: i32) -> (i32, i32, i32) {
    %c0_i32 = arith.constant 0 : i32
    %c0_i32_0 = arith.constant 0 : i32
    return %arg0, %c0_i32, %arg1 : i32, i32, i32
  }
  func.func @transform_1(%arg0: i32, %arg1: i32) -> (i32, i32, i32) {
    %c0_i32 = arith.constant 0 : i32
    %c0_i32_0 = arith.constant 0 : i32
    return %arg0, %c0_i32, %arg1 : i32, i32, i32
  }
  func.func @transform_2(%arg0: i32, %arg1: i32) -> (i32, i32, i32) {
    %c0_i32 = arith.constant 0 : i32
    %c0_i32_0 = arith.constant 0 : i32
    %c0_i32_1 = arith.constant 0 : i32
    return %arg0, %c0_i32, %c0_i32_0 : i32, i32, i32
  }
}

</mosaic_0001>

<bundles_post_ra>
// kernel: tpu_custom_call.1
= control target key start
LH: loop header
LB: loop body
LE: loop exit
PB: predicated region body
PF: predicated region fallthrough
CT: control target
= control target key end

     0   :  { %7 = vsyncpa [#allocation3], 0  ;;  %s461_s0 = inlined_call_operand.hbm [shape: f32[2,4,256], index: 0, kind: input, shape index: {}]   ;;  %s462_s1 = inlined_call_operand.hbm [shape: s32[2,1,256], index: 1, kind: input, shape index: {}]   ;;  %s463_s2 = inlined_call_operand.vmem [shape: f32[1,4,3], index: 2, kind: output, shape index: {}]  }
   0x1   :  { %8 = vsyncpa [#allocation5], 0  ;;  %s324_s9 = smov [#allocation2]   ;;  %s276_s13 = scalar_lea.hbm %s461_s0, 256 }
   0x2   :  { %s14_s10 = sshll.u32 %s324_s9, 4  ;;  %p277_p0 = scmp.ne.s32.totalorder %s461_s0, %s276_s13  ;;  %s15_s10 = int_to_ptr.vmem [resolvable:$true] %s14_s10 }
   0x3   :  { %p280_p1 = scmp.lt.u32.totalorder %s276_s13, %s461_s0 }
   0x5   :  { %p282_p2 = pnand %p280_p1, %p277_p0 }
   0x7   :  { %285 = shalt.err (!%p282_p2)
}
   0x8   :  { %s286_s18 = scalar_lea.vmem %s15_s10, 256  ;;  %p291_p4 = scmp.lt.s32.totalorder %s15_s10, %s15_s10 }
   0x9   :  { %p287_p3 = scmp.ne.s32.totalorder %s15_s10, %s286_s18  ;;  %p292_p5 = scmp.lt.s32.totalorder %s286_s18, %s286_s18 }
   0xb   :  { %p293_p6 = por %p292_p5, %p291_p4 }
   0xd   :  { %p294_p7 = pnand %p293_p6, %p287_p3 }
   0xf   :  { %297 = shalt.err (!%p294_p7)
}
  0x10   :  { %s325_s19 = smov 128   ;;  %s326_s20 = smov 8  }
  0x11   :  { %20 = dma.hbm_to_vmem [thread:$0]  %s461_s0, 256, %s15_s10, [#allocation3], %s325_s19, %s325_s19, %s326_s20  }
  0x12   :  { %s327_s23 = smov [#allocation4]   ;;  %s298_s27 = scalar_lea.hbm %s462_s1, 64 }
  0x13   :  { %s26_s24 = sshll.u32 %s327_s23, 4  ;;  %p299_p8 = scmp.ne.s32.totalorder %s462_s1, %s298_s27  ;;  %s27_s24 = int_to_ptr.vmem [resolvable:$true] %s26_s24 }
  0x14   :  { %p302_p9 = scmp.lt.u32.totalorder %s298_s27, %s462_s1 }
  0x16   :  { %p304_p10 = pnand %p302_p9, %p299_p8 }
  0x18   :  { %307 = shalt.err (!%p304_p10)
}
  0x19   :  { %s308_s4 = scalar_lea.vmem %s27_s24, 64  ;;  %p313_p12 = scmp.lt.s32.totalorder %s27_s24, %s27_s24 }
  0x1a   :  { %p309_p11 = scmp.ne.s32.totalorder %s27_s24, %s308_s4  ;;  %p314_p13 = scmp.lt.s32.totalorder %s308_s4, %s308_s4 }
  0x1c   :  { %p315_p0 = por %p314_p13, %p313_p12 }
  0x1e   :  { %p316_p1 = pnand %p315_p0, %p309_p11 }
  0x20   :  { %319 = shalt.err (!%p316_p1)
}
  0x21   :  { %s328_s0 = smov 32   ;;  %s329_s5 = smov 2  }
  0x22   :  { %32 = dma.hbm_to_vmem [thread:$0]  %s462_s1, 64, %s27_s24, [#allocation5], %s328_s0, %s328_s0, %s329_s5  }
  0x23   :  { %320 = dma.done.wait [#allocation3], 256  }
  0x24   :  { %321 = vsyncadd [#allocation3], 4294967040 }
  0x25   :  { %322 = dma.done.wait [#allocation5], 64  }
  0x26   :  { %323 = vsyncadd [#allocation5], 4294967232  ;;  %v146_v0 = vlaneseq  ;;  %vm43_vm0 = vcmask 19456   ;;  %v330_v1 = vmov 0.0   ;;  %vm53_vm1 = vcmask 1043456   ;;  %v45_v5 = vld [vmem:[#allocation2] sm:$0xff] }
  0x27   :  { %44 = vst.msk [vmem:[%s463_s2] sm:$0xf] %vm43_vm0, %v330_v1  ;;  %v144_v6 = vld [vmem:[#allocation4] sm:$0x3]  ;;  %v46_v7 = vld [vmem:[#allocation2 + $0x8] sm:$0xff]  ;;  %v49_v8 = vcombine.high %v45_v5, %v45_v5  ;;  %v54_v9 = vsel %vm53_vm1, %v45_v5, -inf }
  0x28   :  { %v373_v2 = vshrl.u32 %v146_v0, 7  ;;  %v145_v12 = vld [vmem:[#allocation4 + $0x2] sm:$0x3]  ;;  %v55_v13 = vrot.slane %v54_v9, 4  ;;  %v50_v14 = vcombine.high %v46_v7, %v46_v7  ;;  %v68_v15 = vsel %vm53_vm1, %v46_v7, -inf }
  0x29   :  { %v61_v17 = vsel %vm53_vm1, %v49_v8, -inf  ;;  %v69_v18 = vrot.slane %v68_v15, 4  ;;  %vm235_vm6 = vcmask 3072   ;;  %vm239_vm7 = vcmask 11272  }
  0x2a   :  { %v150_v3 = vsub.s32 0, %v373_v2  ;;  %v154_v4 = vsub.s32 1, %v373_v2  ;;  %v56_v19 = vmax.f32 %v54_v9, %v55_v13  ;;  %v62_v20 = vrot.slane %v61_v17, 4 }
  0x2b   :  { %v75_v21 = vsel %vm53_vm1, %v50_v14, -inf  ;;  %v70_v23 = vmax.f32 %v68_v15, %v69_v18  ;;  %vm243_vm8 = vcmask 19472  }
  0x2c   :  { %v378_v10 = vrot.slane %v144_v6, %v150_v3  ;;  %v380_v11 = vrot.slane %v144_v6, %v154_v4  ;;  %v383_v16 = vrot.slane %v145_v12, %v150_v3  ;;  %v391_v22 = vrot.slane %v145_v12, %v154_v4 }
  0x2d   :  { %v76_v24 = vrot.slane %v75_v21, 4  ;;  %v57_v26 = vrot.slane %v56_v19, 2  ;;  %v63_v27 = vmax.f32 %v61_v17, %v62_v20  ;;  %v71_v29 = vrot.slane %v70_v23, 2 }
  0x2e   :  { %vm164_vm2 = vcmp.eq.s32.totalorder %v378_v10, %v373_v2  ;;  %vm165_vm3 = vcmp.eq.s32.totalorder %v380_v11, %v373_v2  ;;  %vm166_vm4 = vcmp.eq.s32.totalorder %v383_v16, %v373_v2  ;;  %vm167_vm5 = vcmp.eq.s32.totalorder %v391_v22, %v373_v2 }
  0x2f   :  { %v251_v25 = vsel %vm164_vm2, 1.0, %v330_v1  ;;  %v252_v28 = vsel %vm165_vm3, 1.0, %v330_v1  ;;  %v77_v30 = vmax.f32 %v75_v21, %v76_v24  ;;  %v58_v33 = vmax.f32 %v56_v19, %v57_v26 }
  0x30   :  { %v199_v31 = vsel %vm53_vm1, %v251_v25, 0.0  ;;  %v200_v32 = vsel %vm53_vm1, %v252_v28, 0.0  ;;  %v64_v34 = vrot.slane %v63_v27, 2  ;;  %v253_v36 = vsel %vm166_vm4, 1.0, %v330_v1 }
  0x31   :  { %v201_v35 = vadd.f32 %v200_v32, %v199_v31  ;;  %v72_v37 = vmax.f32 %v70_v23, %v71_v29  ;;  %v78_v38 = vrot.slane %v77_v30, 2  ;;  %v254_v39 = vsel %vm167_vm5, 1.0, %v330_v1 }
  0x32   :  { %v204_v40 = vsel %vm53_vm1, %v253_v36, 0.0  ;;  %v59_v41 = vrot.slane %v58_v33, 1  ;;  %v65_v42 = vmax.f32 %v63_v27, %v64_v34  ;;  %v205_v43 = vsel %vm53_vm1, %v254_v39, 0.0 }
  0x33   :  { %202 = vadd.xlane.f32.xlu1 %v201_v35  ;;  %v73_v44 = vrot.slane %v72_v37, 1  ;;  %v79_v45 = vmax.f32 %v77_v30, %v78_v38  ;;  %v206_v46 = vadd.f32 %v205_v43, %v204_v40 }
  0x34   :  { %v60_v47 = vmax.f32 %v58_v33, %v59_v41  ;;  %v66_v48 = vrot.slane %v65_v42, 1 }
  0x35   :  { %v74_v49 = vmax.f32 %v72_v37, %v73_v44  ;;  %v80_v50 = vrot.slane %v79_v45, 1 }
  0x36   :  { %v67_v51 = vmax.f32 %v65_v42, %v66_v48 }
  0x37   :  { %207 = vadd.xlane.f32.xlu1 %v206_v46  ;;  %v81_v52 = vmax.f32 %v79_v45, %v80_v50 }
  0x38   :  { %v86_v53 = vcombine.low %v60_v47, %v67_v51 }
  0x39   :  { %v87_v54 = vcombine.low %v74_v49, %v81_v52 }
  0x3a   :  { %v90_v55 = vsub.f32 %v45_v5, %v86_v53 }
  0x3b   :  { %v91_v56 = vsub.f32 %v46_v7, %v87_v54 }
  0x3c   :  { %v92_v57 = vmul.f32 1.442695, %v90_v55 }
  0x3d   :  { %v94_v58 = vmul.f32 1.442695, %v91_v56 }
  0x3e   :  { %264 = vpow2.f32 %v92_v57 }
  0x3f   :  { %266 = vpow2.f32 %v94_v58 }
  0x48   :  { %v265_v59 = vpop.eup %264 }
  0x49   :  { %v267_v60 = vpop.eup %266  ;;  %v98_v61 = vcombine.high %v265_v59, %v265_v59  ;;  %v102_v62 = vsel %vm53_vm1, %v265_v59, 0.0 }
  0x4a   :  { %v103_v63 = vrot.slane %v102_v62, 4  ;;  %v99_v0 = vcombine.high %v267_v60, %v267_v60  ;;  %v116_v1 = vsel %vm53_vm1, %v267_v60, 0.0 }
  0x4b   :  { %v109_v3 = vsel %vm53_vm1, %v98_v61, 0.0  ;;  %v117_v4 = vrot.slane %v116_v1, 4 }
  0x4c   :  { %v104_v6 = vadd.f32 %v103_v63, %v102_v62  ;;  %v110_v8 = vrot.slane %v109_v3, 4  ;;  %v123_v5 = vsel %vm53_vm1, %v99_v0, 0.0  ;;  %v233_v62 = vld [vmem:[%s463_s2] sm:$0xf] }
  0x4d   :  { %v118_v7 = vadd.f32 %v117_v4, %v116_v1  ;;  %v124_v9 = vrot.slane %v123_v5, 4 }
  0x4e   :  { %v105_v12 = vrot.slane %v104_v6, 2  ;;  %v111_v13 = vadd.f32 %v110_v8, %v109_v3 }
  0x4f   :  { %v119_v14 = vrot.slane %v118_v7, 2  ;;  %v125_v15 = vadd.f32 %v124_v9, %v123_v5 }
  0x50   :  { %v106_v17 = vadd.f32 %v105_v12, %v104_v6  ;;  %v112_v18 = vrot.slane %v111_v13, 2 }
  0x51   :  { %v120_v19 = vadd.f32 %v119_v14, %v118_v7  ;;  %v126_v20 = vrot.slane %v125_v15, 2 }
  0x52   :  { %v107_v21 = vrot.slane %v106_v17, 1  ;;  %v113_v23 = vadd.f32 %v112_v18, %v111_v13 }
  0x53   :  { %v121_v24 = vrot.slane %v120_v19, 1  ;;  %v127_v25 = vadd.f32 %v126_v20, %v125_v15 }
  0x54   :  { %v108_v26 = vadd.f32 %v107_v21, %v106_v17  ;;  %v114_v27 = vrot.slane %v113_v23, 1 }
  0x55   :  { %v122_v28 = vadd.f32 %v121_v24, %v120_v19  ;;  %v128_v29 = vrot.slane %v127_v25, 1 }
  0x56   :  { %v115_v30 = vadd.f32 %v114_v27, %v113_v23  ;;  %268 = vrcp.f32 %v108_v26 }
  0x57   :  { %v129_v31 = vadd.f32 %v128_v29, %v127_v25  ;;  %270 = vrcp.f32 %v122_v28 }
  0x58   :  { %272 = vrcp.f32 %v115_v30 }
  0x59   :  { %274 = vrcp.f32 %v129_v31 }
  0x60   :  { %v269_v32 = vpop.eup %268 }
  0x61   :  { %v271_v33 = vpop.eup %270 }
  0x62   :  { %v273_v34 = vpop.eup %272 }
  0x63   :  { %v275_v35 = vpop.eup %274  ;;  %v138_v36 = vcombine.low %v269_v32, %v273_v34 }
  0x64   :  { %v139_v37 = vcombine.low %v271_v33, %v275_v35 }
  0x65   :  { %v142_v38 = vmul.f32 %v265_v59, %v138_v36 }
  0x66   :  { %v143_v39 = vmul.f32 %v267_v60, %v139_v37 }
  0x67   :  { %v170_v40 = vcombine.high %v142_v38, %v142_v38  ;;  %v174_v41 = vsel %vm164_vm2, %v142_v38, 0.0  ;;  %v212_v42 = vmul.f32 %v142_v38, %v142_v38 }
  0x68   :  { %v178_v43 = vsel %vm53_vm1, %v174_v41, 0.0  ;;  %v171_v44 = vcombine.high %v143_v39, %v143_v39  ;;  %v176_v45 = vsel %vm166_vm4, %v143_v39, 0.0  ;;  %v213_v46 = vmul.f32 %v143_v39, %v143_v39 }
  0x69   :  { %v175_v47 = vsel %vm165_vm3, %v170_v40, 0.0  ;;  %v183_v48 = vsel %vm53_vm1, %v176_v45, 0.0  ;;  %v216_v49 = vcombine.high %v212_v42, %v212_v42  ;;  %v220_v56 = vsel %vm53_vm1, %v212_v42, 0.0 }
  0x6a   :  { %v179_v50 = vsel %vm53_vm1, %v175_v47, 0.0  ;;  %v177_v10 = vsel %vm167_vm5, %v171_v44, 0.0  ;;  %v217_v51 = vcombine.high %v213_v46, %v213_v46  ;;  %v225_v52 = vsel %vm53_vm1, %v213_v46, 0.0 }
  0x6b   :  { %v180_v53 = vadd.f32 %v179_v50, %v178_v43  ;;  %v184_v16 = vsel %vm53_vm1, %v177_v10, 0.0  ;;  %v221_v57 = vsel %vm53_vm1, %v216_v49, 0.0 }
  0x6c   :  { %v226_v54 = vsel %vm53_vm1, %v217_v51, 0.0  ;;  %v185_v11 = vadd.f32 %v184_v16, %v183_v48  ;;  %v222_v58 = vadd.f32 %v221_v57, %v220_v56 }
  0x6d   :  { %181 = vadd.xlane.f32.xlu0 %v180_v53  ;;  %v227_v55 = vadd.f32 %v226_v54, %v225_v52 }
  0x6f   :  { %228 = vadd.xlane.f32.xlu1 %v227_v55 }
  0x71   :  { %186 = vadd.xlane.f32.xlu0 %v185_v11 }
  0x75   :  { %223 = vadd.xlane.f32.xlu0 %v222_v58 }
  0xc0   :  { %v203_v59 = vpop.xlane.xlu1 %202 }
  0xc1   :  { %v209_v3 = vsel %vm53_vm1, %v203_v59, 0.0 }
  0xc4   :  { %v208_v1 = vpop.xlane.xlu1 %207 }
  0xc5   :  { %v210_v4 = vsel %vm53_vm1, %v208_v1, 0.0 }
  0xc6   :  { %v211_v6 = vadd.f32 %v210_v4, %v209_v3 }
  0xfa   :  { %v182_v2 = vpop.xlane.xlu0 %181 }
  0xfb   :  { %v188_v60 = vsel %vm53_vm1, %v182_v2, 0.0 }
  0xfc   :  { %v229_v7 = vpop.xlane.xlu1 %228 }
  0xfd   :  { %v231_v12 = vsel %vm53_vm1, %v229_v7, 0.0 }
  0xfe   :  { %v187_v22 = vpop.xlane.xlu0 %186 }
  0xff   :  { %v189_v61 = vsel %vm53_vm1, %v187_v22, 0.0 }
 0x100   :  { %v190_v63 = vadd.f32 %v189_v61, %v188_v60 }
 0x102   :  { %v234_v0 = vadd.f32 %v233_v62, %v190_v63  ;;  %v224_v9 = vpop.xlane.xlu0 %223 }
 0x103   :  { %v230_v13 = vsel %vm53_vm1, %v224_v9, 0.0 }
 0x104   :  { %236 = vst.msk [vmem:[%s463_s2] sm:$0xf] %vm235_vm6, %v234_v0  ;;  %v232_v14 = vadd.f32 %v231_v12, %v230_v13 }
 0x10b   :  { %v237_v8 = vld [vmem:[%s463_s2] sm:$0xf] }
 0x10c   :  { %v238_v5 = vadd.f32 %v237_v8, %v211_v6 }
 0x10e   :  { %240 = vst.msk [vmem:[%s463_s2] sm:$0xf] %vm239_vm7, %v238_v5 }
 0x115   :  { %v241_v15 = vld [vmem:[%s463_s2] sm:$0xf] }
 0x116   :  { %v242_v17 = vadd.f32 %v241_v15, %v232_v14 }
 0x118   :  { %244 = vst.msk [vmem:[%s463_s2] sm:$0xf] %vm243_vm8, %v242_v17 }
 0x119   :  { %249 = vsyncpa [#allocation3], 1 }
 0x11a   :  { %250 = vsyncpa [#allocation5], 1 }

</bundles_post_ra>
